<compile_context>
chip_gen: v7x
topology: tpu7x:2x2x1
jax: 0.10.0
libtpu: 0.0.40
codegen_flags: <defaults>
</compile_context>

<pallas_src>
import jax
import jax.numpy as jnp
from jax.experimental import pallas as pl
from jax.experimental.pallas import tpu as pltpu


def adaptive_tanh_kernel(alpha_ref, x_ref, o_ref):
    # alpha_ref: (1,) f32 scalar in SMEM.  x_ref/o_ref: (tile_b, tile_d) VMEM tiles.
    alpha = alpha_ref[0]
    xf = x_ref[...].astype(jnp.float32)          # compute tanh in f32 (EUP)
    o_ref[...] = jnp.tanh(alpha * xf).astype(o_ref.dtype)


def _divisors(n):
    out = set()
    i = 1
    while i * i <= n:
        if n % i == 0:
            out.add(i)
            out.add(n // i)
        i += 1
    return sorted(out)


def _pick_tiles(B, D, itemsize, *,
                min_sublane,
                vmem_budget=48 * 1024 * 1024,   # safe on v7x (64 MiB physical VMEM)
                target_tile_bytes=4 * 1024 * 1024,
                min_steps=4):
    """Pick (tile_b, tile_d): lane-dense feature tiles (multiple of 128, <= ~2048),
    sublane-aligned batch tiles, per-tile size in the 1-4 MiB streaming sweet spot,
    >= min_steps grid steps when possible, and double-buffered x+out under budget."""
    # --- feature tile ---
    d_divs = [d for d in _divisors(D) if d % 128 == 0]
    if not d_divs:
        tile_d = D                                  # full-dim block is always legal
    else:
        small = [d for d in d_divs if d <= 2048]
        tile_d = max(small) if small else min(d_divs)

    # --- batch tile ---
    b_divs = [b for b in _divisors(B) if b % min_sublane == 0]
    if not b_divs:
        b_divs = [B]                                # full-dim block is always legal

    def tile_bytes(tb):
        return tb * tile_d * itemsize

    def steps(tb):
        return (B // tb) * (D // tile_d)

    # keep x + out, double-buffered, under the VMEM budget
    cands = [b for b in b_divs if 4 * tile_bytes(b) <= vmem_budget]
    if not cands:
        cands = [min(b_divs)]

    good = [b for b in cands
            if tile_bytes(b) <= target_tile_bytes and steps(b) >= min_steps]
    if good:
        tile_b = max(good)                          # largest tile in the sweet spot
    else:
        under = [b for b in cands if tile_bytes(b) <= target_tile_bytes]
        tile_b = max(under) if under else min(cands)
    return tile_b, tile_d


def _to_slab(x):
    """Reshape x to a sublane-full, lane-dense 2-D slab (B, D)."""
    if x.ndim >= 2:
        return x.reshape((-1, x.shape[-1]))
    n = max(int(x.size), 1)
    for d in (1024, 512, 256, 128):
        if n % d == 0:
            return x.reshape((n // d, d))
    return x.reshape((1, n))


def adaptive_tanh(x, alpha, *, tile_b=None, tile_d=None):
    """x: any-shaped float tensor.  alpha: scalar / (1,) parameter.
    Returns tanh(alpha * x) with the dtype and shape of x."""
    orig_shape = x.shape
    x2 = _to_slab(x)
    B, D = x2.shape
    itemsize = x2.dtype.itemsize
    # native sublane packing: 8 rows for 4-byte, 16 for 2-byte, 32 for 1-byte dtypes
    min_sublane = max(8, 32 // max(itemsize, 1))

    if tile_b is None or tile_d is None:
        pb, pd = _pick_tiles(B, D, itemsize, min_sublane=min_sublane)
        tile_b = pb if tile_b is None else tile_b
        tile_d = pd if tile_d is None else tile_d
    assert B % tile_b == 0 and D % tile_d == 0, "tiles must divide the slab dims"
    grid = (B // tile_b, D // tile_d)

    alpha1 = jnp.asarray(alpha, jnp.float32).reshape((1,))   # SMEM scalar

    cost = pl.CostEstimate(
        flops=int(B * D),                  # one multiply per element
        transcendentals=int(B * D),        # one tanh per element
        bytes_accessed=int(2 * B * D * itemsize + 4),
    )

    live_bytes = 4 * tile_b * tile_d * itemsize     # x + out, double-buffered
    vmem_limit = min(max(32 * 1024 * 1024, 2 * live_bytes), 48 * 1024 * 1024)

    out = pl.pallas_call(
        adaptive_tanh_kernel,
        out_shape=jax.ShapeDtypeStruct((B, D), x2.dtype),
        grid_spec=pltpu.PrefetchScalarGridSpec(
            num_scalar_prefetch=0,
            grid=grid,
            in_specs=[
                # alpha: whole (1,) array resident in SMEM, read as a scalar
                pl.BlockSpec(memory_space=pltpu.MemorySpace.SMEM),
                # x: (tile_b, tile_d) lane-dense streaming tile
                pl.BlockSpec((tile_b, tile_d), lambda i, j: (i, j)),
            ],
            out_specs=pl.BlockSpec((tile_b, tile_d), lambda i, j: (i, j)),
        ),
        compiler_params=pltpu.CompilerParams(
            dimension_semantics=("parallel", "parallel"),
            vmem_limit_bytes=vmem_limit,
        ),
        cost_estimate=cost,
    )(alpha1, x2)

    return out.reshape(orig_shape)


def reference_forward(x, alpha):
    a = jnp.asarray(alpha, jnp.float32).reshape(())
    return jnp.tanh(a * x.astype(jnp.float32)).astype(x.dtype)


if __name__ == "__main__":
    key = jax.random.PRNGKey(0)
    key, ka, kx = jax.random.split(key, 3)

    # alpha ~ torch.rand(1): uniform in [0, 1)
    alpha = jax.random.uniform(ka, (1,), jnp.float32)

    # Small deterministic input: 64 rows x 256 lane-dense features.
    # Tile picker -> (16, 256) blocks, grid=(4, 1): >= 2 steps per v7x TensorCore.
    batch, feat = 64, 256
    x = jax.random.uniform(kx, (batch, feat), jnp.float32, minval=-2.0, maxval=2.0)

    out = adaptive_tanh(x, alpha)
    out = jax.block_until_ready(out)

    ref = reference_forward(x, alpha)
    assert out.shape == x.shape
    assert out.dtype == x.dtype
    assert jnp.allclose(out, ref, atol=1e-6, rtol=1e-6), "mismatch vs. pure-JAX reference"

    print("KERNEL_OK")
</pallas_src>

<mosaic_0001>
module attributes {stable_mosaic.version = 11 : i64} {
  func.func @adaptive_tanh_kernel(%arg0: i32, %arg1: i32, %arg2: memref<1xf32, #tpu.memory_space<smem>>, %arg3: memref<16x256xf32, #tpu.memory_space<vmem>>, %arg4: memref<16x256xf32, #tpu.memory_space<vmem>>) attributes {dimension_semantics = [#tpu.dimension_semantics<parallel>, #tpu.dimension_semantics<parallel>], iteration_bounds = array<i64: 4, 1>, scalar_prefetch = 0 : i64, scratch_operands = 0 : i64, tpu.core_type = #tpu.core_type<tc>, window_params = [{transform_indices = @transform_0, window_bounds = array<i64: 1>}, {transform_indices = @transform_1, window_bounds = array<i64: 16, 256>}, {transform_indices = @transform_2, window_bounds = array<i64: 16, 256>}]} {
    %c0 = arith.constant 0 : index
    %0 = memref.load %arg2[%c0] : memref<1xf32, #tpu.memory_space<smem>>
    %c0_0 = arith.constant 0 : index
    %c0_1 = arith.constant 0 : index
    %1 = vector.load %arg3[%c0_0, %c0_1] : memref<16x256xf32, #tpu.memory_space<vmem>>, vector<16x256xf32>
    %2 = vector.broadcast %0 : f32 to vector<16x256xf32>
    %3 = arith.mulf %2, %1 : vector<16x256xf32>
    %4 = math.tanh %3 : vector<16x256xf32>
    %c0_2 = arith.constant 0 : index
    %c0_3 = arith.constant 0 : index
    %5 = vector.load %arg4[%c0_2, %c0_3] : memref<16x256xf32, #tpu.memory_space<vmem>>, vector<16x256xf32>
    tpu.vector_store %arg4[%c0_2, %c0_3], %4 {strides = array<i32>} : memref<16x256xf32, #tpu.memory_space<vmem>>, vector<16x256xf32>,
    return
  }
  func.func @transform_0(%arg0: i32, %arg1: i32) -> i32 {
    %c0_i32 = arith.constant 0 : i32
    %c0_i32_0 = arith.constant 0 : i32
    return %c0_i32 : i32
  }
  func.func @transform_1(%arg0: i32, %arg1: i32) -> (i32, i32) {
    %c0_i32 = arith.constant 0 : i32
    return %arg0, %arg1 : i32, i32
  }
  func.func @transform_2(%arg0: i32, %arg1: i32) -> (i32, i32) {
    %c0_i32 = arith.constant 0 : i32
    return %arg0, %arg1 : i32, i32
  }
}

</mosaic_0001>

<bundles_post_ra>
// kernel: tpu_custom_call.1
= control target key start
LH: loop header
LB: loop body
LE: loop exit
PB: predicated region body
PF: predicated region fallthrough
CT: control target
= control target key end

     0   :  { %s714_s0 = inlined_call_operand.<no memory space> [shape: f32[1], index: 0, kind: input, shape index: {}]   ;;  %s715_s1 = inlined_call_operand.hbm [shape: f32[64,256], index: 1, kind: input, shape index: {}]   ;;  %s716_s2 = inlined_call_operand.hbm [shape: f32[64,256], index: 2, kind: output, shape index: {}]  }
   0x1   :  { %7 = sst [smem:[#allocation2]] %s714_s0 }
   0x2   :  { %8 = vsyncpa [#allocation4], 0 }
   0x3   :  { %10 = vsyncpa [#allocation4 + $0x1], 0 }
   0x4   :  { %11 = vsyncpa [#allocation5], 0 }
   0x5   :  { %13 = vsyncpa [#allocation5 + $0x1], 0  ;;  %s541_s11 = smov 0   ;;  %s543_s12 = smov 0  }
   0x6   :  { %s545_s13 = smov 0   ;;  %s547_s14 = smov 0  }
   0x7   :  { %s549_s15 = smov 0   ;;  %s551_s16 = smov 0  }
   0x8 LB: > { %s308_s0 = sadd.s32 4294967295, %s515_s16   ;;  %s309_s17 = sadd.s32 4294967294, %s515_s16   ;;  %s515_s16 = sphi %s551_s16, %s19_s16   ;;  %s511_s15 = sphi %s549_s15, %s730_s15   ;;  %s507_s14 = sphi %s547_s14, %s729_s14   ;;  %s503_s13 = sphi %s545_s13, %s728_s13   ;;  %s499_s12 = sphi %s543_s12, %s727_s12   ;;  %s495_s11 = sphi %s541_s11, %s726_s11  }
   0x9   : > { %s31_s18 = sadd.s32 1, %s511_s15  ;;  %s61_s19 = sadd.s32 1, %s503_s13 }
   0xa   : > { %p33_p0 = scmp.ge.s32.totalorder %s31_s18, 4  ;;  %p68_p1 = scmp.ne.s32.totalorder %s503_s13, %s499_s12 }
   0xb   : > { %p69_p2 = scmp.eq.s32.totalorder %s515_s16, 0  ;;  %p74_p3 = scmp.ne.s32.totalorder %s499_s12, %s495_s11 }
   0xc   : > { %s732_s18 = smov (%p33_p0, %s31_s18), 0  ;;  %p75_p5 = scmp.eq.s32.totalorder %s308_s0, 0 }
   0xd   : > { %p582_p4 = por %p69_p2, %p68_p1  ;;  %s56_s21 = ssub.s32 %s511_s15, %s732_s18 }
   0xe   : > { %p100_p6 = scmp.eq.s32.totalorder %s308_s0, 3  ;;  %p59_p7 = scmp.eq.s32.totalorder %s56_s21, 0 }
   0xf   : > { %p588_p8 = por %p75_p5, %p74_p3  ;;  %p106_p10 = scmp.eq.s32.totalorder %s309_s17, 3 }
  0x10   : > { %p592_p9 = por %p100_p6, %p68_p1  ;;  %p341_p12 = scmp.lt.s32.totalorder %s515_s16, 4 }
  0x11   : > { %s597_s24 = scalar_select %p59_p7, %s503_s13, %s61_s19  }
  0x12   : > { %s720_s23 = scalar_select %p592_p9, 1, 0 }
  0x13   : > { %p599_p11 = por %p106_p10, %p74_p3  ;;  %s129_s26 = sand.u32 1, %s503_s13  }
  0x14   : > { %s312_s27 = sshll.u32 %s129_s26, 5  ;;  %s326_s28 = sshll.u32 %s511_s15, 9 }
  0x15   : > { %s721_s25 = scalar_select %p599_p11, 1, 0 }
  0x16   : > { %s609_s3 = scalar_lea.hbm %s715_s1, %s326_s28  ;;  %s133_s4 = scalar_lea.vmem [#allocation3], %s312_s27 }
  0x17   : > { %s143_s5 = sshll.u32 %s133_s4, 4  ;;  %p615_p13 = pnand %p341_p12, %p582_p4  ;;  %s611_s5 = int_to_ptr.vmem [resolvable:$true] %s143_s5 }
  0x18   : > { %s620_s7 = scalar_lea.sflag [#allocation4], %s129_s26  ;;  %s403_s8 = scalar_lea.hbm %s609_s3, 512 }
  0x19   : > { %p404_p1 = scmp.ne.s32.totalorder %s609_s3, %s403_s8  ;;  %p405_p2 = pneg %p615_p13 }
  0x1a   : > { %s408_s0 = scalar_lea.hbm %s715_s1, 2048  ;;  %p409_p4 = scmp.lt.u32.totalorder %s609_s3, %s715_s1 }
  0x1b   : > { %p406_p3 = pnand %p405_p2, %p404_p1  ;;  %p410_p6 = scmp.lt.u32.totalorder %s408_s0, %s403_s8 }
  0x1c   : > { %p412_p10 = scmp.lt.u32.totalorder %s403_s8, %s609_s3 }
  0x1d   : > { %p407_p5 = pneg %p406_p3  ;;  %p411_p7 = por %p410_p6, %p409_p4 }
  0x1f   : > { %p413_p12 = por %p412_p10, %p411_p7 }
  0x21   : > { %p414_p0 = pnand %p413_p12, %p407_p5 }
  0x23   : > { %417 = shalt.err (!%p414_p0)
}
  0x24   : > { %s418_s20 = scalar_lea.vmem %s611_s5, 512  ;;  %s517_s21 = smov [#allocation3]  }
  0x25   : > { %p419_p1 = scmp.ne.s32.totalorder %s611_s5, %s418_s20  ;;  %s423_s26 = sshll.u32 %s517_s21, 4  ;;  %s424_s26 = int_to_ptr.vmem [resolvable:$false] %s423_s26 }
  0x26   : > { %s425_s27 = scalar_lea.vmem %s424_s26, 1024  ;;  %p426_p9 = scmp.lt.s32.totalorder %s611_s5, %s424_s26 }
  0x27   : > { %p421_p3 = pnand %p419_p1, %p405_p2  ;;  %p427_p4 = scmp.lt.s32.totalorder %s425_s27, %s418_s20 }
  0x29   : > { %p422_p11 = pneg %p421_p3  ;;  %p428_p6 = por %p427_p4, %p426_p9 }
  0x2b   : > { %p429_p7 = pnand %p428_p6, %p422_p11 }
  0x2d   : > { %432 = shalt.err (!%p429_p7)
}
  0x2e   : > { %s518_s28 = smov 256   ;;  %s519_s29 = smov 16  }
  0x2f   : > { %336 = dma.hbm_to_vmem [thread:$0]  (!%p615_p13), %s609_s3, 512, %s611_s5, %s620_s7, %s518_s28, %s518_s28, %s519_s29  }
  0x30   : > { %p151_p0 = scmp.lt.s32.totalorder %s515_s16, 5  ;;  %p723_p2 = scmp.ge.s32.totalorder %s515_s16, 1 }
  0x32   : > { %p152_p5 = pnand %p723_p2, %p151_p0 }
  0x33   : > { %s652_s30 = sand.u32 (!%p152_p5), 1, %s499_s12  }
  0x34   : > { %155 = sbr.rel (%p152_p5) target bundleno = 98 (0x62), region = 28  ;;  %s317_s4 = sshll.u32 (!%p152_p5), %s652_s30, 5 }
  0x35   : > { %s158_s8 = scalar_lea.sflag (!%p152_p5), [#allocation4], %s652_s30  ;;  %s161_s9 = scalar_lea.vmem (!%p152_p5), [#allocation3], %s317_s4 }
  0x3b   : > { %486 = dma.done.wait (%p588_p8), %s158_s8, 512  }
  0x3c   : > { %488 = vsyncadd (%p588_p8), %s158_s8, 4294966784  ;;  %s186_s6 = sld [smem:[#allocation2]]  ;;  %v187_v1 = vld [vmem:[%s161_s9] sm:$0xff]  ;;  %v188_v2 = vld [vmem:[%s161_s9 + $0x8] sm:$0xff]  ;;  %s181_s3 = scalar_lea.vmem [#allocation6], %s317_s4 }
  0x3d   : > { %v189_v3 = vld [vmem:[%s161_s9 + $0x10] sm:$0xff]  ;;  %v190_v7 = vld [vmem:[%s161_s9 + $0x18] sm:$0xff]  ;;  %s221_s22 = sshll.u32 %s181_s3, 4  ;;  %s328_s5 = sshll.u32 %s507_s14, 9  ;;  %s661_s22 = int_to_ptr.vmem [resolvable:$true] %s221_s22 }
  0x3e   : > { %s666_s0 = scalar_lea.hbm %s716_s2, %s328_s5  ;;  %s205_s17 = scalar_lea.sflag [#allocation5], %s652_s30 }
  0x3f   : > { %s433_s14 = scalar_lea.vmem %s661_s22, 512  ;;  %p724_p9 = scmp.ne.s32.totalorder %s720_s23, 0 }
  0x40   : > { %p434_p8 = scmp.ne.s32.totalorder %s661_s22, %s433_s14  ;;  %s520_s19 = smov [#allocation6]  }
  0x41   : > { %s437_s20 = sshll.u32 %s520_s19, 4  ;;  %s438_s20 = int_to_ptr.vmem [resolvable:$false] %s437_s20 }
  0x42   : > { %v191_v0 = vstv %s186_s6  ;;  %p435_p11 = pnand %p434_p8, %p724_p9  ;;  %s439_s21 = scalar_lea.vmem %s438_s20, 1024 }
  0x43   : > { %v192_v4 = vmul.f32 %v191_v0, %v187_v1  ;;  %v193_v5 = vmul.f32 %v191_v0, %v188_v2  ;;  %v194_v6 = vmul.f32 %v191_v0, %v189_v3  ;;  %v195_v8 = vmul.f32 %v191_v0, %v190_v7  ;;  %p440_p10 = scmp.lt.s32.totalorder %s661_s22, %s438_s20  ;;  %p441_p12 = scmp.lt.s32.totalorder %s439_s21, %s433_s14 }
  0x44   : > { %p436_p13 = pneg %p435_p11 }
  0x45   : > { %395 = vtanh.f32 %v192_v4  ;;  %p442_p1 = por %p441_p12, %p440_p10 }
  0x46   : > { %397 = vtanh.f32 %v193_v5 }
  0x47   : > { %399 = vtanh.f32 %v194_v6  ;;  %p443_p3 = pnand %p442_p1, %p436_p13 }
  0x48   : > { %401 = vtanh.f32 %v195_v8 }
  0x4f   : > { %v396_v9 = vpop.eup %395 }
  0x50   : > { %v398_v10 = vpop.eup %397  ;;  %200 = vst [vmem:[%s181_s3] sm:$0xff] %v396_v9 }
  0x51   : > { %v400_v11 = vpop.eup %399  ;;  %201 = vst [vmem:[%s181_s3 + $0x8] sm:$0xff] %v398_v10 }
  0x52   : > { %v402_v12 = vpop.eup %401  ;;  %202 = vst [vmem:[%s181_s3 + $0x10] sm:$0xff] %v400_v11 }
  0x53   : > { %203 = vst [vmem:[%s181_s3 + $0x18] sm:$0xff] %v402_v12 }
  0x54   : > { %446 = shalt.err (!%p443_p3)
}
  0x55   : > { %s447_s26 = scalar_lea.hbm %s666_s0, 512  ;;  %s451_s29 = scalar_lea.hbm %s716_s2, 2048 }
  0x56   : > { %p448_p4 = scmp.ne.s32.totalorder %s666_s0, %s447_s26  ;;  %p452_p0 = scmp.lt.u32.totalorder %s666_s0, %s716_s2 }
  0x57   : > { %p453_p2 = scmp.lt.u32.totalorder %s451_s29, %s447_s26  ;;  %p455_p8 = scmp.lt.u32.totalorder %s447_s26, %s666_s0 }
  0x58   : > { %p449_p6 = pnand %p448_p4, %p724_p9 }
  0x59   : > { %p454_p5 = por %p453_p2, %p452_p0 }
  0x5a   : > { %p450_p7 = pneg %p449_p6 }
  0x5b   : > { %p456_p11 = por %p455_p8, %p454_p5 }
  0x5d   : > { %p457_p13 = pnand %p456_p11, %p450_p7 }
  0x5f   : > { %460 = shalt.err (!%p457_p13)
}
  0x60   : > { %s521_s9 = smov 256   ;;  %s522_s6 = smov 16  }
  0x61   : > { %331 = dma.vmem_to_hbm [thread:$0]  (%p724_p9), %s661_s22, 512, %s666_s0, %s205_s17, %s521_s9, %s521_s9, %s522_s6  }
  0x62 PF: > { %p342_p10 = scmp.ge.s32.totalorder %s515_s16, 2  ;;  %s236_s3 = sand.u32 1, %s495_s11  }
  0x63   : > { %p725_p12 = scmp.ne.s32.totalorder %s721_s25, 0  ;;  %s237_s5 = scalar_lea.sflag [#allocation5], %s236_s3 }
  0x65   : > { %p338_p1 = pnand %p342_p10, %p725_p12 }
  0x67   : > { %490 = dma.done.wait (!%p338_p1), %s237_s5, 512  }
  0x68   : > { %492 = vsyncadd (!%p338_p1), %s237_s5, 4294966784  ;;  %s19_s16 = sadd.s32 1, %s515_s16   ;;  %s726_s11 = smov %s499_s12 }
  0x69   : > { %p16_p3 = scmp.ge.s32.totalorder %s19_s16, 6   ;;  %s727_s12 = smov %s503_s13 }
  0x6a   : > { %s728_s13 = smov %s597_s24  ;;  %s729_s14 = smov %s511_s15 }
  0x6b   : > { %s730_s15 = smov %s732_s18  ;;  %18 = sbr.rel (!%p16_p3) target bundleno = 8 (0x8), region = 73 }
  0x72   :  { %242 = vsyncpa [#allocation4], 1 }
  0x73   :  { %244 = vsyncpa [#allocation4 + $0x1], 1 }
  0x74   :  { %245 = vsyncpa [#allocation5], 1 }
  0x75   :  { %247 = vsyncpa [#allocation5 + $0x1], 1 }

</bundles_post_ra>
